<compile_context>
chip_gen: v7x
topology: tpu7x:2x2x1
jax: 0.10.0
libtpu: 0.0.40
codegen_flags: <defaults>
</compile_context>

<pallas_src>
import jax
import jax.numpy as jnp
from jax.experimental import pallas as pl
from jax.experimental.pallas import tpu as pltpu


def decoder_kernel(x_ref, w1_ref, b1_ref, w2_ref, b2_ref, o_ref):
    # Cast the activation tile to bf16 in-kernel (avoids a wrapper-side copy of x).
    x = x_ref[...].astype(jnp.bfloat16)
    # Hidden layer: Linear(latent -> intermediate) + ReLU. bf16 MXU matmul, f32 acc.
    h = jnp.dot(x, w1_ref[...], preferred_element_type=jnp.float32)
    h = jnp.maximum(h + b1_ref[...], 0.0)                      # VPU ReLU in f32
    # Output layer: Linear(intermediate -> original).
    y = jnp.dot(h.astype(w2_ref.dtype), w2_ref[...],
                preferred_element_type=jnp.float32)
    o_ref[...] = (y + b2_ref[...]).astype(o_ref.dtype)


def _round_up(v, m):
    return ((v + m - 1) // m) * m


def _pad_axis(a, axis, target):
    pad = target - a.shape[axis]
    if pad == 0:
        return a
    widths = [(0, 0)] * a.ndim
    widths[axis] = (0, pad)
    return jnp.pad(a, widths)


def prepare_decoder_params(w1, b1, w2, b2):
    """Pad feature dims to multiples of 128 and cast to bf16 ONCE (reuse across calls)."""
    latent, inter = w1.shape
    orig = w2.shape[1]
    lat_p = _round_up(latent, 128)
    int_p = _round_up(inter, 128)
    org_p = _round_up(orig, 128)
    w1p = _pad_axis(_pad_axis(jnp.asarray(w1), 0, lat_p), 1, int_p).astype(jnp.bfloat16)
    w2p = _pad_axis(_pad_axis(jnp.asarray(w2), 0, int_p), 1, org_p).astype(jnp.bfloat16)
    b1p = _pad_axis(jnp.asarray(b1).reshape(1, -1), 1, int_p).astype(jnp.float32)
    b2p = _pad_axis(jnp.asarray(b2).reshape(1, -1), 1, org_p).astype(jnp.float32)
    return {"w1": w1p, "b1": b1p, "w2": w2p, "b2": b2p,
            "dims": (latent, inter, orig)}


def _choose_tile(n, lat_p, int_p, org_p, x_bytes, out_bytes):
    # Grid-invariant VMEM (conservatively assume double-buffered weights even
    # though we request Buffered(1)): bf16 W1/W2 + f32 biases.
    fixed = 2 * (lat_p * int_p + int_p * org_p) * 2 + 2 * (int_p + org_p) * 4
    # Per-row VMEM: double-buffered x / out tiles + f32 h / y intermediates.
    per_row = 2 * lat_p * x_bytes + 2 * org_p * out_bytes + (int_p + org_p) * 4
    # 40 MiB total target is safe on v7x (64 MiB physical); ample on v5e/v6e (128 MiB).
    budget = max((40 << 20) - fixed - (2 << 20), 4 << 20)
    tile_cap = max(8, min(1024, (budget // per_row) // 8 * 8))
    if n >= 16:
        # >= 2 row tiles so ("parallel",) can shard across v7x's 2 TensorCores.
        tile_cap = min(tile_cap, _round_up(pl.cdiv(n, 2), 8))
    num_tiles = pl.cdiv(n, tile_cap)
    tile_n = _round_up(pl.cdiv(n, num_tiles), 8)   # balanced tiles -> <8 padded rows/tile
    return tile_n, num_tiles * tile_n


def decoder_forward(x, params, *, out_dtype=jnp.bfloat16):
    """relu(x @ W1 + b1) @ W2 + b2 with params from prepare_decoder_params()."""
    w1p, b1p, w2p, b2p = params["w1"], params["b1"], params["w2"], params["b2"]
    latent, inter, orig = params["dims"]
    lat_p, int_p = w1p.shape
    org_p = w2p.shape[1]
    n = x.shape[0]
    assert x.shape[1] == latent, (x.shape, latent)

    out_dtype = jnp.dtype(out_dtype)
    out_bytes = out_dtype.itemsize
    tile_n, n_p = _choose_tile(n, lat_p, int_p, org_p,
                               jnp.dtype(x.dtype).itemsize, out_bytes)
    grid = (n_p // tile_n,)

    # Only touch x in the wrapper when padding is actually required; otherwise the
    # kernel DMAs the original array and casts to bf16 per tile (no extra HBM pass).
    if latent != lat_p or n_p != n:
        xp = _pad_axis(_pad_axis(x, 1, lat_p), 0, n_p).astype(jnp.bfloat16)
    else:
        xp = x
    xp_bytes = jnp.dtype(xp.dtype).itemsize

    flops = 2 * n_p * (lat_p * int_p + int_p * org_p)
    bytes_accessed = (xp.size * xp_bytes + (w1p.size + w2p.size) * 2
                      + (b1p.size + b2p.size) * 4 + n_p * org_p * out_bytes)

    vmem_needed = (2 * (lat_p * int_p + int_p * org_p) * 2     # weights (worst-case 2x)
                   + 2 * (int_p + org_p) * 4                   # biases
                   + 2 * tile_n * lat_p * xp_bytes             # x tile, double-buffered
                   + 2 * tile_n * org_p * out_bytes            # out tile, double-buffered
                   + tile_n * (int_p + org_p) * 4)             # f32 h / y temporaries
    vmem_limit = min(max(vmem_needed * 5 // 4, 16 << 20), 48 << 20)

    def resident_spec(shape, single_buffered):
        if single_buffered and hasattr(pl, "Buffered"):
            return pl.BlockSpec(shape, lambda i: (0, 0),
                                pipeline_mode=pl.Buffered(1))
        return pl.BlockSpec(shape, lambda i: (0, 0))

    def run(single_buffered_weights):
        return pl.pallas_call(
            decoder_kernel,
            out_shape=jax.ShapeDtypeStruct((n_p, org_p), out_dtype),
            grid_spec=pltpu.PrefetchScalarGridSpec(
                num_scalar_prefetch=0,
                grid=grid,
                in_specs=[
                    pl.BlockSpec((tile_n, lat_p), lambda i: (i, 0)),          # x: row-tiled
                    resident_spec((lat_p, int_p), single_buffered_weights),   # W1 resident
                    resident_spec((1, int_p), single_buffered_weights),       # b1 resident
                    resident_spec((int_p, org_p), single_buffered_weights),   # W2 resident
                    resident_spec((1, org_p), single_buffered_weights),       # b2 resident
                ],
                out_specs=pl.BlockSpec((tile_n, org_p), lambda i: (i, 0)),
            ),
            compiler_params=pltpu.CompilerParams(
                dimension_semantics=("parallel",),      # row tiles are independent
                vmem_limit_bytes=int(vmem_limit),
            ),
            cost_estimate=pl.CostEstimate(
                flops=flops, transcendentals=0, bytes_accessed=bytes_accessed),
        )(xp, w1p, b1p, w2p, b2p)

    try:
        out_p = run(True)      # single-buffered resident weights (halves their VMEM)
    except Exception:          # pipeline_mode / Buffered(1) unsupported -> default buffering
        out_p = run(False)

    if n_p != n or org_p != orig:
        out_p = out_p[:n, :orig]   # strip row / lane padding
    return out_p


def decoder_ref(x, w1, b1, w2, b2):
    h = jnp.maximum(x @ w1 + b1.reshape(1, -1), 0.0)
    return h @ w2 + b2.reshape(1, -1)


if __name__ == "__main__":
    # Small shapes consistent with Decoder(latent_dim, intermediate_dim, original_dim).
    batch = 8
    latent_dim = 32
    intermediate_dim = 64
    original_dim = 128

    key = jax.random.PRNGKey(0)
    kx, kw1, kb1, kw2, kb2 = jax.random.split(key, 5)

    x = jax.random.normal(kx, (batch, latent_dim), dtype=jnp.float32)
    # Deterministic parameter init (layouts are [in, out], equivalent to nn.Linear weights).
    w1 = jax.random.normal(kw1, (latent_dim, intermediate_dim), dtype=jnp.float32) * 0.1
    b1 = jax.random.normal(kb1, (1, intermediate_dim), dtype=jnp.float32) * 0.1
    w2 = jax.random.normal(kw2, (intermediate_dim, original_dim), dtype=jnp.float32) * 0.1
    b2 = jax.random.normal(kb2, (1, original_dim), dtype=jnp.float32) * 0.1

    params = prepare_decoder_params(w1, b1, w2, b2)   # pad/cast weights once, reuse per call
    out = decoder_forward(x, params)                  # bf16 output by default (mem-bound win)
    out = jax.block_until_ready(out)

    # Correctness vs. pure-JAX f32 reference (bf16 MXU path + bf16 store -> loose tolerance).
    ref = decoder_ref(x, w1, b1, w2, b2)
    assert out.shape == (batch, original_dim), out.shape
    out_f32 = out.astype(jnp.float32)
    err = float(jnp.max(jnp.abs(out_f32 - ref)))
    assert jnp.allclose(out_f32, ref, atol=3e-2, rtol=3e-2), err

    print("KERNEL_OK")
</pallas_src>

<mosaic_0001>
module attributes {stable_mosaic.version = 11 : i64} {
  func.func @decoder_kernel(%arg0: i32, %arg1: memref<8x128xbf16, #tpu.memory_space<vmem>>, %arg2: memref<128x128xbf16, #tpu.memory_space<vmem>>, %arg3: memref<1x128xf32, #tpu.memory_space<vmem>>, %arg4: memref<128x128xbf16, #tpu.memory_space<vmem>>, %arg5: memref<1x128xf32, #tpu.memory_space<vmem>>, %arg6: memref<8x128xbf16, #tpu.memory_space<vmem>>) attributes {dimension_semantics = [#tpu.dimension_semantics<parallel>], iteration_bounds = array<i64: 1>, scalar_prefetch = 0 : i64, scratch_operands = 0 : i64, tpu.core_type = #tpu.core_type<tc>, window_params = [{transform_indices = @transform_0, window_bounds = array<i64: 8, 128>}, {pipeline_mode = #tpu.pipeline_mode<synchronous>, transform_indices = @transform_1, window_bounds = array<i64: 128, 128>}, {pipeline_mode = #tpu.pipeline_mode<synchronous>, transform_indices = @transform_2, window_bounds = array<i64: 1, 128>}, {pipeline_mode = #tpu.pipeline_mode<synchronous>, transform_indices = @transform_3, window_bounds = array<i64: 128, 128>}, {pipeline_mode = #tpu.pipeline_mode<synchronous>, transform_indices = @transform_4, window_bounds = array<i64: 1, 128>}, {transform_indices = @transform_5, window_bounds = array<i64: 8, 128>}]} {
    %c0 = arith.constant 0 : index
    %c0_0 = arith.constant 0 : index
    %0 = vector.load %arg1[%c0, %c0_0] : memref<8x128xbf16, #tpu.memory_space<vmem>>, vector<8x128xbf16>
    %c0_1 = arith.constant 0 : index
    %c0_2 = arith.constant 0 : index
    %1 = vector.load %arg2[%c0_1, %c0_2] : memref<128x128xbf16, #tpu.memory_space<vmem>>, vector<128x128xbf16>
    %cst = arith.constant dense<0.000000e+00> : vector<8x128xf32>
    %2 = tpu.matmul %0, %1, %cst {dimension_numbers = #tpu.dot_dimension_numbers<[1], [0], [0], [1], [0, 0, 1, 1], [], []>} : vector<8x128xbf16>, vector<128x128xbf16>, vector<8x128xf32> -> vector<8x128xf32>
    %c0_3 = arith.constant 0 : index
    %c0_4 = arith.constant 0 : index
    %3 = vector.load %arg3[%c0_3, %c0_4] : memref<1x128xf32, #tpu.memory_space<vmem>>, vector<1x128xf32>
    %4 = vector.broadcast %3 : vector<1x128xf32> to vector<8x128xf32>
    %5 = arith.addf %2, %4 : vector<8x128xf32>
    %cst_5 = arith.constant 0.000000e+00 : f32
    %6 = vector.broadcast %cst_5 : f32 to vector<8x128xf32>
    %7 = arith.maximumf %5, %6 : vector<8x128xf32>
    %8 = arith.truncf %7 : vector<8x128xf32> to vector<8x128xbf16>
    %c0_6 = arith.constant 0 : index
    %c0_7 = arith.constant 0 : index
    %9 = vector.load %arg4[%c0_6, %c0_7] : memref<128x128xbf16, #tpu.memory_space<vmem>>, vector<128x128xbf16>
    %cst_8 = arith.constant dense<0.000000e+00> : vector<8x128xf32>
    %10 = tpu.matmul %8, %9, %cst_8 {dimension_numbers = #tpu.dot_dimension_numbers<[1], [0], [0], [1], [0, 0, 1, 1], [], []>} : vector<8x128xbf16>, vector<128x128xbf16>, vector<8x128xf32> -> vector<8x128xf32>
    %c0_9 = arith.constant 0 : index
    %c0_10 = arith.constant 0 : index
    %11 = vector.load %arg5[%c0_9, %c0_10] : memref<1x128xf32, #tpu.memory_space<vmem>>, vector<1x128xf32>
    %12 = vector.broadcast %11 : vector<1x128xf32> to vector<8x128xf32>
    %13 = arith.addf %10, %12 : vector<8x128xf32>
    %14 = arith.truncf %13 : vector<8x128xf32> to vector<8x128xbf16>
    %c0_11 = arith.constant 0 : index
    %c0_12 = arith.constant 0 : index
    %15 = vector.load %arg6[%c0_11, %c0_12] : memref<8x128xbf16, #tpu.memory_space<vmem>>, vector<8x128xbf16>
    tpu.vector_store %arg6[%c0_11, %c0_12], %14 {strides = array<i32>} : memref<8x128xbf16, #tpu.memory_space<vmem>>, vector<8x128xbf16>,
    return
  }
  func.func @transform_0(%arg0: i32) -> (i32, i32) {
    %c0_i32 = arith.constant 0 : i32
    %c0_i32_0 = arith.constant 0 : i32
    return %arg0, %c0_i32 : i32, i32
  }
  func.func @transform_1(%arg0: i32) -> (i32, i32) {
    %c0_i32 = arith.constant 0 : i32
    %c0_i32_0 = arith.constant 0 : i32
    %c0_i32_1 = arith.constant 0 : i32
    return %c0_i32, %c0_i32_0 : i32, i32
  }
  func.func @transform_2(%arg0: i32) -> (i32, i32) {
    %c0_i32 = arith.constant 0 : i32
    %c0_i32_0 = arith.constant 0 : i32
    %c0_i32_1 = arith.constant 0 : i32
    return %c0_i32, %c0_i32_0 : i32, i32
  }
  func.func @transform_3(%arg0: i32) -> (i32, i32) {
    %c0_i32 = arith.constant 0 : i32
    %c0_i32_0 = arith.constant 0 : i32
    %c0_i32_1 = arith.constant 0 : i32
    return %c0_i32, %c0_i32_0 : i32, i32
  }
  func.func @transform_4(%arg0: i32) -> (i32, i32) {
    %c0_i32 = arith.constant 0 : i32
    %c0_i32_0 = arith.constant 0 : i32
    %c0_i32_1 = arith.constant 0 : i32
    return %c0_i32, %c0_i32_0 : i32, i32
  }
  func.func @transform_5(%arg0: i32) -> (i32, i32) {
    %c0_i32 = arith.constant 0 : i32
    %c0_i32_0 = arith.constant 0 : i32
    return %arg0, %c0_i32 : i32, i32
  }
}

module attributes {stable_mosaic.version = 11 : i64} {
  func.func @decoder_kernel(%arg0: i32, %arg1: memref<8x128xbf16, #tpu.memory_space<vmem>>, %arg2: memref<128x128xbf16, #tpu.memory_space<vmem>>, %arg3: memref<1x128xf32, #tpu.memory_space<vmem>>, %arg4: memref<128x128xbf16, #tpu.memory_space<vmem>>, %arg5: memref<1x128xf32, #tpu.memory_space<vmem>>, %arg6: memref<8x128xbf16, #tpu.memory_space<vmem>>) attributes {dimension_semantics = [#tpu.dimension_semantics<parallel>], iteration_bounds = array<i64: 1>, scalar_prefetch = 0 : i64, scratch_operands = 0 : i64, tpu.core_type = #tpu.core_type<tc>, window_params = [{transform_indices = @transform_0, window_bounds = array<i64: 8, 128>}, {pipeline_mode = #tpu.pipeline_mode<synchronous>, transform_indices = @transform_1, window_bounds = array<i64: 128, 128>}, {pipeline_mode = #tpu.pipeline_mode<synchronous>, transform_indices = @transform_2, window_bounds = array<i64: 1, 128>}, {pipeline_mode = #tpu.pipeline_mode<synchronous>, transform_indices = @transform_3, window_bounds = array<i64: 128, 128>}, {pipeline_mode = #tpu.pipeline_mode<synchronous>, transform_indices = @transform_4, window_bounds = array<i64: 1, 128>}, {transform_indices = @transform_5, window_bounds = array<i64: 8, 128>}]} {
    %c0 = arith.constant 0 : index
    %c0_0 = arith.constant 0 : index
    %0 = vector.load %arg1[%c0, %c0_0] : memref<8x128xbf16, #tpu.memory_space<vmem>>, vector<8x128xbf16>
    %c0_1 = arith.constant 0 : index
    %c0_2 = arith.constant 0 : index
    %1 = vector.load %arg2[%c0_1, %c0_2] : memref<128x128xbf16, #tpu.memory_space<vmem>>, vector<128x128xbf16>
    %cst = arith.constant dense<0.000000e+00> : vector<8x128xf32>
    %2 = tpu.matmul %0, %1, %cst {dimension_numbers = #tpu.dot_dimension_numbers<[1], [0], [0], [1], [0, 0, 1, 1], [], []>} : vector<8x128xbf16>, vector<128x128xbf16>, vector<8x128xf32> -> vector<8x128xf32>
    %c0_3 = arith.constant 0 : index
    %c0_4 = arith.constant 0 : index
    %3 = vector.load %arg3[%c0_3, %c0_4] : memref<1x128xf32, #tpu.memory_space<vmem>>, vector<1x128xf32>
    %4 = vector.broadcast %3 : vector<1x128xf32> to vector<8x128xf32>
    %5 = arith.addf %2, %4 : vector<8x128xf32>
    %cst_5 = arith.constant 0.000000e+00 : f32
    %6 = vector.broadcast %cst_5 : f32 to vector<8x128xf32>
    %7 = arith.maximumf %5, %6 : vector<8x128xf32>
    %8 = arith.truncf %7 : vector<8x128xf32> to vector<8x128xbf16>
    %c0_6 = arith.constant 0 : index
    %c0_7 = arith.constant 0 : index
    %9 = vector.load %arg4[%c0_6, %c0_7] : memref<128x128xbf16, #tpu.memory_space<vmem>>, vector<128x128xbf16>
    %cst_8 = arith.constant dense<0.000000e+00> : vector<8x128xf32>
    %10 = tpu.matmul %8, %9, %cst_8 {dimension_numbers = #tpu.dot_dimension_numbers<[1], [0], [0], [1], [0, 0, 1, 1], [], []>} : vector<8x128xbf16>, vector<128x128xbf16>, vector<8x128xf32> -> vector<8x128xf32>
    %c0_9 = arith.constant 0 : index
    %c0_10 = arith.constant 0 : index
    %11 = vector.load %arg5[%c0_9, %c0_10] : memref<1x128xf32, #tpu.memory_space<vmem>>, vector<1x128xf32>
    %12 = vector.broadcast %11 : vector<1x128xf32> to vector<8x128xf32>
    %13 = arith.addf %10, %12 : vector<8x128xf32>
    %14 = arith.truncf %13 : vector<8x128xf32> to vector<8x128xbf16>
    %c0_11 = arith.constant 0 : index
    %c0_12 = arith.constant 0 : index
    %15 = vector.load %arg6[%c0_11, %c0_12] : memref<8x128xbf16, #tpu.memory_space<vmem>>, vector<8x128xbf16>
    tpu.vector_store %arg6[%c0_11, %c0_12], %14 {strides = array<i32>} : memref<8x128xbf16, #tpu.memory_space<vmem>>, vector<8x128xbf16>,
    return
  }
  func.func @transform_0(%arg0: i32) -> (i32, i32) {
    %c0_i32 = arith.constant 0 : i32
    %c0_i32_0 = arith.constant 0 : i32
    return %arg0, %c0_i32 : i32, i32
  }
  func.func @transform_1(%arg0: i32) -> (i32, i32) {
    %c0_i32 = arith.constant 0 : i32
    %c0_i32_0 = arith.constant 0 : i32
    %c0_i32_1 = arith.constant 0 : i32
    return %c0_i32, %c0_i32_0 : i32, i32
  }
  func.func @transform_2(%arg0: i32) -> (i32, i32) {
    %c0_i32 = arith.constant 0 : i32
    %c0_i32_0 = arith.constant 0 : i32
    %c0_i32_1 = arith.constant 0 : i32
    return %c0_i32, %c0_i32_0 : i32, i32
  }
  func.func @transform_3(%arg0: i32) -> (i32, i32) {
    %c0_i32 = arith.constant 0 : i32
    %c0_i32_0 = arith.constant 0 : i32
    %c0_i32_1 = arith.constant 0 : i32
    return %c0_i32, %c0_i32_0 : i32, i32
  }
  func.func @transform_4(%arg0: i32) -> (i32, i32) {
    %c0_i32 = arith.constant 0 : i32
    %c0_i32_0 = arith.constant 0 : i32
    %c0_i32_1 = arith.constant 0 : i32
    return %c0_i32, %c0_i32_0 : i32, i32
  }
  func.func @transform_5(%arg0: i32) -> (i32, i32) {
    %c0_i32 = arith.constant 0 : i32
    %c0_i32_0 = arith.constant 0 : i32
    return %arg0, %c0_i32 : i32, i32
  }
}

</mosaic_0001>

<bundles_post_ra>
// kernel: tpu_custom_call.1
= control target key start
LH: loop header
LB: loop body
LE: loop exit
PB: predicated region body
PF: predicated region fallthrough
CT: control target
= control target key end

     0   :  { %10 = vsyncpa [#allocation3], 0  ;;  %s596_s0 = inlined_call_operand.hbm [shape: bf16[8,128], index: 0, kind: input, shape index: {}]   ;;  %s597_s1 = inlined_call_operand.hbm [shape: bf16[128,128], index: 1, kind: input, shape index: {}]   ;;  %s598_s2 = inlined_call_operand.vmem [shape: f32[1,128], index: 2, kind: input, shape index: {}]   ;;  %s599_s3 = inlined_call_operand.hbm [shape: bf16[128,128], index: 3, kind: input, shape index: {}]   ;;  %s600_s4 = inlined_call_operand.vmem [shape: f32[1,128], index: 4, kind: input, shape index: {}]   ;;  %s601_s5 = inlined_call_operand.hbm [shape: bf16[8,128], index: 5, kind: output, shape index: {}]  }
   0x1   :  { %11 = vsyncpa [#allocation6], 0 }
   0x2   :  { %12 = vsyncpa [#allocation4], 0  ;;  %s498_s18 = smov [#allocation5]   ;;  %s404_s22 = scalar_lea.hbm %s597_s1, 1024 }
   0x3   :  { %s28_s19 = sshll.u32 %s498_s18, 4  ;;  %p405_p0 = scmp.ne.s32.totalorder %s597_s1, %s404_s22  ;;  %s29_s19 = int_to_ptr.vmem [resolvable:$true] %s28_s19 }
   0x4   :  { %p408_p1 = scmp.lt.u32.totalorder %s404_s22, %s597_s1 }
   0x6   :  { %p410_p2 = pnand %p408_p1, %p405_p0 }
   0x8   :  { %413 = shalt.err (!%p410_p2)
}
   0x9   :  { %s414_s27 = scalar_lea.vmem %s29_s19, 1024  ;;  %p419_p4 = scmp.lt.s32.totalorder %s29_s19, %s29_s19 }
   0xa   :  { %p415_p3 = scmp.ne.s32.totalorder %s29_s19, %s414_s27  ;;  %p420_p5 = scmp.lt.s32.totalorder %s414_s27, %s414_s27 }
   0xc   :  { %p421_p6 = por %p420_p5, %p419_p4 }
   0xe   :  { %p422_p7 = pnand %p421_p6, %p415_p3 }
  0x10   :  { %425 = shalt.err (!%p422_p7)
}
  0x11   :  { %s499_s28 = smov 64   ;;  %s500_s29 = smov 4  }
  0x12   :  { %34 = dma.hbm_to_vmem [thread:$0]  %s597_s1, 1024, %s29_s19, [#allocation6], %s499_s28, %s499_s28, %s500_s29  }
  0x13   :  { %s501_s7 = smov [#allocation2]   ;;  %s502_s9 = smov [#allocation7]  }
  0x14   :  { %s19_s8 = sshll.u32 %s501_s7, 4  ;;  %s42_s10 = sshll.u32 %s502_s9, 4  ;;  %s20_s8 = int_to_ptr.vmem [resolvable:$true] %s19_s8  ;;  %s43_s10 = int_to_ptr.vmem [resolvable:$true] %s42_s10 }
  0x15   :  { %s426_s13 = scalar_lea.hbm %s596_s0, 64 }
  0x16   :  { %p427_p8 = scmp.ne.s32.totalorder %s596_s0, %s426_s13  ;;  %p430_p9 = scmp.lt.u32.totalorder %s426_s13, %s596_s0 }
  0x18   :  { %p432_p10 = pnand %p430_p9, %p427_p8 }
  0x1a   :  { %435 = shalt.err (!%p432_p10)
}
  0x1b   :  { %s436_s1 = scalar_lea.vmem %s20_s8, 64  ;;  %p441_p12 = scmp.lt.s32.totalorder %s20_s8, %s20_s8 }
  0x1c   :  { %p437_p11 = scmp.ne.s32.totalorder %s20_s8, %s436_s1  ;;  %p442_p13 = scmp.lt.s32.totalorder %s436_s1, %s436_s1 }
  0x1e   :  { %p443_p0 = por %p442_p13, %p441_p12 }
  0x20   :  { %p444_p1 = pnand %p443_p0, %p437_p11 }
  0x22   :  { %447 = shalt.err (!%p444_p1)
}
  0x23   :  { %22 = dma.hbm_to_vmem [thread:$0]  %s596_s0, 64, %s20_s8, [#allocation3]  }
  0x24   :  { %s448_s22 = scalar_lea.hbm %s599_s3, 1024 }
  0x25   :  { %p449_p2 = scmp.ne.s32.totalorder %s599_s3, %s448_s22  ;;  %p452_p3 = scmp.lt.u32.totalorder %s448_s22, %s599_s3 }
  0x27   :  { %p454_p4 = pnand %p452_p3, %p449_p2 }
  0x29   :  { %457 = shalt.err (!%p454_p4)
}
  0x2a   :  { %s458_s27 = scalar_lea.vmem %s43_s10, 1024  ;;  %p463_p6 = scmp.lt.s32.totalorder %s43_s10, %s43_s10 }
  0x2b   :  { %p459_p5 = scmp.ne.s32.totalorder %s43_s10, %s458_s27  ;;  %p464_p7 = scmp.lt.s32.totalorder %s458_s27, %s458_s27 }
  0x2d   :  { %p465_p8 = por %p464_p7, %p463_p6 }
  0x2f   :  { %p466_p9 = pnand %p465_p8, %p459_p5 }
  0x31   :  { %469 = shalt.err (!%p466_p9)
}
  0x32   :  { %48 = dma.hbm_to_vmem [thread:$0]  %s599_s3, 1024, %s43_s10, [#allocation6], %s499_s28, %s499_s28, %s500_s29  }
  0x33   :  { %492 = dma.done.wait [#allocation3], 64  }
  0x34   :  { %493 = vsyncadd [#allocation3], 4294967232 }
  0x35   :  { %494 = dma.done.wait [#allocation6], 2048  }
  0x36   :  { %495 = vsyncadd [#allocation6], 4294965248  ;;  %v503_v0 = vmov 0.0   ;;  %vm504_vm0 = vmmov 0   ;;  %v388_v1 = vld [vmem:[#allocation5] sm:$0xff]   ;;  %v389_v2 = vld [vmem:[#allocation5 + $0x8] sm:$0xff]  }
  0x37   :  { %340 = vmatprep.subr.bf16.mxu0 %v503_v0  ;;  %356 = vmatprep.mubr.msk.bf16.mxu0 %vm504_vm0, %v503_v0  ;;  %v390_v3 = vld [vmem:[#allocation5 + $0x10] sm:$0xff]   ;;  %v396_v4 = vld [vmem:[#allocation7] sm:$0xff]   ;;  %v391_v5 = vld [vmem:[#allocation5 + $0x18] sm:$0xff]   ;;  %s505_s7 = smov [#allocation8]  }
  0x38   :  { %360 = vmatprep.subr.bf16.mxu1 %v503_v0  ;;  %376 = vmatprep.mubr.msk.bf16.mxu1 %vm504_vm0, %v503_v0  ;;  %v397_v6 = vld [vmem:[#allocation7 + $0x8] sm:$0xff]   ;;  %v392_v7 = vld [vmem:[#allocation5 + $0x20] sm:$0xff]   ;;  %v398_v8 = vld [vmem:[#allocation7 + $0x10] sm:$0xff]   ;;  %s294_s8 = sshll.u32 %s505_s7, 4  ;;  %s295_s8 = int_to_ptr.vmem [resolvable:$true] %s294_s8 }
  0x39   :  { %341 = vmatpush3.bf16.msra.mxu0 %v388_v1  ;;  %361 = vmatpush3.bf16.msra.mxu1 %v396_v4  ;;  %v393_v9 = vld [vmem:[#allocation5 + $0x28] sm:$0xff]   ;;  %v399_v10 = vld [vmem:[#allocation7 + $0x18] sm:$0xff]   ;;  %v394_v11 = vld [vmem:[#allocation5 + $0x30] sm:$0xff]   ;;  %p475_p11 = scmp.lt.s32.totalorder %s295_s8, %s295_s8 }
  0x3a   :  { %342 = vmatprep.subr.bf16.mxu0 %v503_v0  ;;  %362 = vmatprep.subr.bf16.mxu1 %v503_v0  ;;  %v400_v12 = vld [vmem:[#allocation7 + $0x20] sm:$0xff]   ;;  %v395_v13 = vld [vmem:[#allocation5 + $0x38] sm:$0xff]   ;;  %v401_v14 = vld [vmem:[#allocation7 + $0x28] sm:$0xff]  }
  0x3b   :  { %v61_v15 = vld [vmem:[#allocation2] sm:$0xf]  ;;  %v402_v16 = vld [vmem:[#allocation7 + $0x30] sm:$0xff]  }
  0x3c   :  { %v403_v17 = vld [vmem:[#allocation7 + $0x38] sm:$0xff]  }
  0x3d   :  { %343 = vmatpush3.bf16.msra.mxu0 %v389_v2  ;;  %363 = vmatpush3.bf16.msra.mxu1 %v397_v6  ;;  %v304_v18 = vld [vmem:[%s598_s2] ss:$0 sm:$0xff]  ;;  %s470_s2 = scalar_lea.vmem %s295_s8, 64 }
  0x3e   :  { %344 = vmatprep.subr.bf16.mxu0 %v503_v0  ;;  %364 = vmatprep.subr.bf16.mxu1 %v503_v0  ;;  %v313_v26 = vld [vmem:[%s600_s4] ss:$0 sm:$0xff]  ;;  %p471_p10 = scmp.ne.s32.totalorder %s295_s8, %s470_s2  ;;  %p476_p12 = scmp.lt.s32.totalorder %s470_s2, %s470_s2 }
  0x40   :  { %p477_p13 = por %p476_p12, %p475_p11 }
  0x41   :  { %345 = vmatpush3.bf16.msra.mxu0 %v390_v3  ;;  %365 = vmatpush3.bf16.msra.mxu1 %v398_v8 }
  0x42   :  { %346 = vmatprep.subr.bf16.mxu0 %v503_v0  ;;  %366 = vmatprep.subr.bf16.mxu1 %v503_v0  ;;  %p478_p0 = pnand %p477_p13, %p471_p10 }
  0x45   :  { %347 = vmatpush3.bf16.msra.mxu0 %v391_v5  ;;  %367 = vmatpush3.bf16.msra.mxu1 %v399_v10 }
  0x46   :  { %348 = vmatprep.subr.bf16.mxu0 %v503_v0  ;;  %368 = vmatprep.subr.bf16.mxu1 %v503_v0 }
  0x49   :  { %349 = vmatpush3.bf16.msra.mxu0 %v392_v7  ;;  %369 = vmatpush3.bf16.msra.mxu1 %v400_v12 }
  0x4a   :  { %350 = vmatprep.subr.bf16.mxu0 %v503_v0  ;;  %370 = vmatprep.subr.bf16.mxu1 %v503_v0 }
  0x4d   :  { %351 = vmatpush3.bf16.msra.mxu0 %v393_v9  ;;  %371 = vmatpush3.bf16.msra.mxu1 %v401_v14 }
  0x4e   :  { %352 = vmatprep.subr.bf16.mxu0 %v503_v0  ;;  %372 = vmatprep.subr.bf16.mxu1 %v503_v0 }
  0x51   :  { %353 = vmatpush3.bf16.msra.mxu0 %v394_v11  ;;  %373 = vmatpush3.bf16.msra.mxu1 %v402_v16 }
  0x52   :  { %354 = vmatprep.subr.bf16.mxu0 %v503_v0  ;;  %374 = vmatprep.subr.bf16.mxu1 %v503_v0 }
  0x55   :  { %355 = vmatpush3.bf16.msra.mxu0 %v395_v13  ;;  %375 = vmatpush3.bf16.msra.mxu1 %v403_v17 }
  0x58   :  { %357 = vmatmul.mubr.bf16.vlgmr.msra.gmra.mrb[0].mxu0 %v61_v15 }
 0x12b   :  { %v167_v19 = vpop.f32.mrb[0].mxu0 }
 0x12c   :  { %v168_v20 = vadd.f32 %v304_v18, %v167_v19  ;;  %v358_v21 = vpop.f32.mrb[1].mxu0 }
 0x12d   :  { %v170_v22 = vpop.f32.mrb[2].mxu0 }
 0x12e   :  { %v173_v23 = vmax.f32 %v168_v20, 0.0  ;;  %v359_v24 = vpop.f32.mrb[3].mxu0 }
 0x130   :  { %v174_v25 = vpack.c.bf16 %v173_v23, %v173_v23 }
 0x132   :  { %377 = vmatmul.mubr.bf16.vlgmr.msra.gmra.mrb[0].mxu1 %v174_v25 }
 0x205   :  { %v280_v27 = vpop.f32.mrb[0].mxu1 }
 0x206   :  { %v281_v28 = vadd.f32 %v313_v26, %v280_v27  ;;  %v378_v29 = vpop.f32.mrb[1].mxu1 }
 0x207   :  { %v283_v30 = vpop.f32.mrb[2].mxu1 }
 0x208   :  { %v286_v31 = vpack.c.bf16 %v281_v28, %v281_v28  ;;  %v379_v32 = vpop.f32.mrb[3].mxu1 }
 0x20a   :  { %287 = vst [vmem:[#allocation8] sm:$0xf] %v286_v31 }
 0x20b   :  { %481 = shalt.err (!%p478_p0)
}
 0x20c   :  { %s482_s4 = scalar_lea.hbm %s601_s5, 64 }
 0x20d   :  { %p483_p1 = scmp.ne.s32.totalorder %s601_s5, %s482_s4  ;;  %p486_p2 = scmp.lt.u32.totalorder %s482_s4, %s601_s5 }
 0x20f   :  { %p488_p3 = pnand %p486_p2, %p483_p1 }
 0x211   :  { %491 = shalt.err (!%p488_p3)
}
 0x212   :  { %297 = dma.vmem_to_hbm [thread:$0]  %s295_s8, 64, %s601_s5, [#allocation4]  }
 0x213   :  { %496 = dma.done.wait [#allocation4], 64  }
 0x214   :  { %497 = vsyncadd [#allocation4], 4294967232 }
 0x215   :  { %301 = vsyncpa [#allocation3], 1 }
 0x216   :  { %302 = vsyncpa [#allocation6], 1 }
 0x217   :  { %303 = vsyncpa [#allocation4], 1 }

// kernel: tpu_custom_call.1
= control target key start
LH: loop header
LB: loop body
LE: loop exit
PB: predicated region body
PF: predicated region fallthrough
CT: control target
= control target key end

     0   :  { %10 = vsyncpa [#allocation3], 0  ;;  %s596_s0 = inlined_call_operand.hbm [shape: bf16[8,128], index: 0, kind: input, shape index: {}]   ;;  %s597_s1 = inlined_call_operand.hbm [shape: bf16[128,128], index: 1, kind: input, shape index: {}]   ;;  %s598_s2 = inlined_call_operand.vmem [shape: f32[1,128], index: 2, kind: input, shape index: {}]   ;;  %s599_s3 = inlined_call_operand.hbm [shape: bf16[128,128], index: 3, kind: input, shape index: {}]   ;;  %s600_s4 = inlined_call_operand.vmem [shape: f32[1,128], index: 4, kind: input, shape index: {}]   ;;  %s601_s5 = inlined_call_operand.hbm [shape: bf16[8,128], index: 5, kind: output, shape index: {}]  }
   0x1   :  { %11 = vsyncpa [#allocation6], 0 }
   0x2   :  { %12 = vsyncpa [#allocation4], 0  ;;  %s498_s18 = smov [#allocation5]   ;;  %s404_s22 = scalar_lea.hbm %s597_s1, 1024 }
   0x3   :  { %s28_s19 = sshll.u32 %s498_s18, 4  ;;  %p405_p0 = scmp.ne.s32.totalorder %s597_s1, %s404_s22  ;;  %s29_s19 = int_to_ptr.vmem [resolvable:$true] %s28_s19 }
   0x4   :  { %p408_p1 = scmp.lt.u32.totalorder %s404_s22, %s597_s1 }
   0x6   :  { %p410_p2 = pnand %p408_p1, %p405_p0 }
   0x8   :  { %413 = shalt.err (!%p410_p2)
}
   0x9   :  { %s414_s27 = scalar_lea.vmem %s29_s19, 1024  ;;  %p419_p4 = scmp.lt.s32.totalorder %s29_s19, %s29_s19 }
   0xa   :  { %p415_p3 = scmp.ne.s32.totalorder %s29_s19, %s414_s27  ;;  %p420_p5 = scmp.lt.s32.totalorder %s414_s27, %s414_s27 }
   0xc   :  { %p421_p6 = por %p420_p5, %p419_p4 }
   0xe   :  { %p422_p7 = pnand %p421_p6, %p415_p3 }
  0x10   :  { %425 = shalt.err (!%p422_p7)
}
  0x11   :  { %s499_s28 = smov 64   ;;  %s500_s29 = smov 4  }
  0x12   :  { %34 = dma.hbm_to_vmem [thread:$0]  %s597_s1, 1024, %s29_s19, [#allocation6], %s499_s28, %s499_s28, %s500_s29  }
  0x13   :  { %s501_s7 = smov [#allocation2]   ;;  %s502_s9 = smov [#allocation7]  }
  0x14   :  { %s19_s8 = sshll.u32 %s501_s7, 4  ;;  %s42_s10 = sshll.u32 %s502_s9, 4  ;;  %s20_s8 = int_to_ptr.vmem [resolvable:$true] %s19_s8  ;;  %s43_s10 = int_to_ptr.vmem [resolvable:$true] %s42_s10 }
  0x15   :  { %s426_s13 = scalar_lea.hbm %s596_s0, 64 }
  0x16   :  { %p427_p8 = scmp.ne.s32.totalorder %s596_s0, %s426_s13  ;;  %p430_p9 = scmp.lt.u32.totalorder %s426_s13, %s596_s0 }
  0x18   :  { %p432_p10 = pnand %p430_p9, %p427_p8 }
  0x1a   :  { %435 = shalt.err (!%p432_p10)
}
  0x1b   :  { %s436_s1 = scalar_lea.vmem %s20_s8, 64  ;;  %p441_p12 = scmp.lt.s32.totalorder %s20_s8, %s20_s8 }
  0x1c   :  { %p437_p11 = scmp.ne.s32.totalorder %s20_s8, %s436_s1  ;;  %p442_p13 = scmp.lt.s32.totalorder %s436_s1, %s436_s1 }
  0x1e   :  { %p443_p0 = por %p442_p13, %p441_p12 }
  0x20   :  { %p444_p1 = pnand %p443_p0, %p437_p11 }
  0x22   :  { %447 = shalt.err (!%p444_p1)
}
  0x23   :  { %22 = dma.hbm_to_vmem [thread:$0]  %s596_s0, 64, %s20_s8, [#allocation3]  }
  0x24   :  { %s448_s22 = scalar_lea.hbm %s599_s3, 1024 }
  0x25   :  { %p449_p2 = scmp.ne.s32.totalorder %s599_s3, %s448_s22  ;;  %p452_p3 = scmp.lt.u32.totalorder %s448_s22, %s599_s3 }
  0x27   :  { %p454_p4 = pnand %p452_p3, %p449_p2 }
  0x29   :  { %457 = shalt.err (!%p454_p4)
}
  0x2a   :  { %s458_s27 = scalar_lea.vmem %s43_s10, 1024  ;;  %p463_p6 = scmp.lt.s32.totalorder %s43_s10, %s43_s10 }
  0x2b   :  { %p459_p5 = scmp.ne.s32.totalorder %s43_s10, %s458_s27  ;;  %p464_p7 = scmp.lt.s32.totalorder %s458_s27, %s458_s27 }
  0x2d   :  { %p465_p8 = por %p464_p7, %p463_p6 }
  0x2f   :  { %p466_p9 = pnand %p465_p8, %p459_p5 }
  0x31   :  { %469 = shalt.err (!%p466_p9)
}
  0x32   :  { %48 = dma.hbm_to_vmem [thread:$0]  %s599_s3, 1024, %s43_s10, [#allocation6], %s499_s28, %s499_s28, %s500_s29  }
  0x33   :  { %492 = dma.done.wait [#allocation3], 64  }
  0x34   :  { %493 = vsyncadd [#allocation3], 4294967232 }
  0x35   :  { %494 = dma.done.wait [#allocation6], 2048  }
  0x36   :  { %495 = vsyncadd [#allocation6], 4294965248  ;;  %v503_v0 = vmov 0.0   ;;  %vm504_vm0 = vmmov 0   ;;  %v388_v1 = vld [vmem:[#allocation5] sm:$0xff]   ;;  %v389_v2 = vld [vmem:[#allocation5 + $0x8] sm:$0xff]  }
  0x37   :  { %340 = vmatprep.subr.bf16.mxu0 %v503_v0  ;;  %356 = vmatprep.mubr.msk.bf16.mxu0 %vm504_vm0, %v503_v0  ;;  %v390_v3 = vld [vmem:[#allocation5 + $0x10] sm:$0xff]   ;;  %v396_v4 = vld [vmem:[#allocation7] sm:$0xff]   ;;  %v391_v5 = vld [vmem:[#allocation5 + $0x18] sm:$0xff]   ;;  %s505_s7 = smov [#allocation8]  }
  0x38   :  { %360 = vmatprep.subr.bf16.mxu1 %v503_v0  ;;  %376 = vmatprep.mubr.msk.bf16.mxu1 %vm504_vm0, %v503_v0  ;;  %v397_v6 = vld [vmem:[#allocation7 + $0x8] sm:$0xff]   ;;  %v392_v7 = vld [vmem:[#allocation5 + $0x20] sm:$0xff]   ;;  %v398_v8 = vld [vmem:[#allocation7 + $0x10] sm:$0xff]   ;;  %s294_s8 = sshll.u32 %s505_s7, 4  ;;  %s295_s8 = int_to_ptr.vmem [resolvable:$true] %s294_s8 }
  0x39   :  { %341 = vmatpush3.bf16.msra.mxu0 %v388_v1  ;;  %361 = vmatpush3.bf16.msra.mxu1 %v396_v4  ;;  %v393_v9 = vld [vmem:[#allocation5 + $0x28] sm:$0xff]   ;;  %v399_v10 = vld [vmem:[#allocation7 + $0x18] sm:$0xff]   ;;  %v394_v11 = vld [vmem:[#allocation5 + $0x30] sm:$0xff]   ;;  %p475_p11 = scmp.lt.s32.totalorder %s295_s8, %s295_s8 }
  0x3a   :  { %342 = vmatprep.subr.bf16.mxu0 %v503_v0  ;;  %362 = vmatprep.subr.bf16.mxu1 %v503_v0  ;;  %v400_v12 = vld [vmem:[#allocation7 + $0x20] sm:$0xff]   ;;  %v395_v13 = vld [vmem:[#allocation5 + $0x38] sm:$0xff]   ;;  %v401_v14 = vld [vmem:[#allocation7 + $0x28] sm:$0xff]  }
  0x3b   :  { %v61_v15 = vld [vmem:[#allocation2] sm:$0xf]  ;;  %v402_v16 = vld [vmem:[#allocation7 + $0x30] sm:$0xff]  }
  0x3c   :  { %v403_v17 = vld [vmem:[#allocation7 + $0x38] sm:$0xff]  }
  0x3d   :  { %343 = vmatpush3.bf16.msra.mxu0 %v389_v2  ;;  %363 = vmatpush3.bf16.msra.mxu1 %v397_v6  ;;  %v304_v18 = vld [vmem:[%s598_s2] ss:$0 sm:$0xff]  ;;  %s470_s2 = scalar_lea.vmem %s295_s8, 64 }
  0x3e   :  { %344 = vmatprep.subr.bf16.mxu0 %v503_v0  ;;  %364 = vmatprep.subr.bf16.mxu1 %v503_v0  ;;  %v313_v26 = vld [vmem:[%s600_s4] ss:$0 sm:$0xff]  ;;  %p471_p10 = scmp.ne.s32.totalorder %s295_s8, %s470_s2  ;;  %p476_p12 = scmp.lt.s32.totalorder %s470_s2, %s470_s2 }
  0x40   :  { %p477_p13 = por %p476_p12, %p475_p11 }
  0x41   :  { %345 = vmatpush3.bf16.msra.mxu0 %v390_v3  ;;  %365 = vmatpush3.bf16.msra.mxu1 %v398_v8 }
  0x42   :  { %346 = vmatprep.subr.bf16.mxu0 %v503_v0  ;;  %366 = vmatprep.subr.bf16.mxu1 %v503_v0  ;;  %p478_p0 = pnand %p477_p13, %p471_p10 }
  0x45   :  { %347 = vmatpush3.bf16.msra.mxu0 %v391_v5  ;;  %367 = vmatpush3.bf16.msra.mxu1 %v399_v10 }
  0x46   :  { %348 = vmatprep.subr.bf16.mxu0 %v503_v0  ;;  %368 = vmatprep.subr.bf16.mxu1 %v503_v0 }
  0x49   :  { %349 = vmatpush3.bf16.msra.mxu0 %v392_v7  ;;  %369 = vmatpush3.bf16.msra.mxu1 %v400_v12 }
  0x4a   :  { %350 = vmatprep.subr.bf16.mxu0 %v503_v0  ;;  %370 = vmatprep.subr.bf16.mxu1 %v503_v0 }
  0x4d   :  { %351 = vmatpush3.bf16.msra.mxu0 %v393_v9  ;;  %371 = vmatpush3.bf16.msra.mxu1 %v401_v14 }
  0x4e   :  { %352 = vmatprep.subr.bf16.mxu0 %v503_v0  ;;  %372 = vmatprep.subr.bf16.mxu1 %v503_v0 }
  0x51   :  { %353 = vmatpush3.bf16.msra.mxu0 %v394_v11  ;;  %373 = vmatpush3.bf16.msra.mxu1 %v402_v16 }
  0x52   :  { %354 = vmatprep.subr.bf16.mxu0 %v503_v0  ;;  %374 = vmatprep.subr.bf16.mxu1 %v503_v0 }
  0x55   :  { %355 = vmatpush3.bf16.msra.mxu0 %v395_v13  ;;  %375 = vmatpush3.bf16.msra.mxu1 %v403_v17 }
  0x58   :  { %357 = vmatmul.mubr.bf16.vlgmr.msra.gmra.mrb[0].mxu0 %v61_v15 }
 0x12b   :  { %v167_v19 = vpop.f32.mrb[0].mxu0 }
 0x12c   :  { %v168_v20 = vadd.f32 %v304_v18, %v167_v19  ;;  %v358_v21 = vpop.f32.mrb[1].mxu0 }
 0x12d   :  { %v170_v22 = vpop.f32.mrb[2].mxu0 }
 0x12e   :  { %v173_v23 = vmax.f32 %v168_v20, 0.0  ;;  %v359_v24 = vpop.f32.mrb[3].mxu0 }
 0x130   :  { %v174_v25 = vpack.c.bf16 %v173_v23, %v173_v23 }
 0x132   :  { %377 = vmatmul.mubr.bf16.vlgmr.msra.gmra.mrb[0].mxu1 %v174_v25 }
 0x205   :  { %v280_v27 = vpop.f32.mrb[0].mxu1 }
 0x206   :  { %v281_v28 = vadd.f32 %v313_v26, %v280_v27  ;;  %v378_v29 = vpop.f32.mrb[1].mxu1 }
 0x207   :  { %v283_v30 = vpop.f32.mrb[2].mxu1 }
 0x208   :  { %v286_v31 = vpack.c.bf16 %v281_v28, %v281_v28  ;;  %v379_v32 = vpop.f32.mrb[3].mxu1 }
 0x20a   :  { %287 = vst [vmem:[#allocation8] sm:$0xf] %v286_v31 }
 0x20b   :  { %481 = shalt.err (!%p478_p0)
}
 0x20c   :  { %s482_s4 = scalar_lea.hbm %s601_s5, 64 }
 0x20d   :  { %p483_p1 = scmp.ne.s32.totalorder %s601_s5, %s482_s4  ;;  %p486_p2 = scmp.lt.u32.totalorder %s482_s4, %s601_s5 }
 0x20f   :  { %p488_p3 = pnand %p486_p2, %p483_p1 }
 0x211   :  { %491 = shalt.err (!%p488_p3)
}
 0x212   :  { %297 = dma.vmem_to_hbm [thread:$0]  %s295_s8, 64, %s601_s5, [#allocation4]  }
 0x213   :  { %496 = dma.done.wait [#allocation4], 64  }
 0x214   :  { %497 = vsyncadd [#allocation4], 4294967232 }
 0x215   :  { %301 = vsyncpa [#allocation3], 1 }
 0x216   :  { %302 = vsyncpa [#allocation6], 1 }
 0x217   :  { %303 = vsyncpa [#allocation4], 1 }

</bundles_post_ra>
